<compile_context>
chip_gen: v7x
topology: tpu7x:2x2x1
jax: 0.10.0
libtpu: 0.0.40
codegen_flags: <defaults>
</compile_context>

<pallas_src>
import functools

import jax
import jax.numpy as jnp
from jax.experimental import pallas as pl
from jax.experimental.pallas import tpu as pltpu


_F32_TEMPS = 4  # worst-case resident f32 (tile_n, tile_c) intermediates in-kernel


def _round_up(v, m):
    return ((v + m - 1) // m) * m


def _vmem_capacity_bytes():
    try:
        return int(pltpu.get_tpu_info().vmem_capacity_bytes)
    except Exception:
        return 64 * 1024 * 1024  # conservative fallback = v7x per-TC physical VMEM


def _choose_tiles(n, c, itemsize, cap):
    """Pick (tile_n, tile_c) from the worst-case in-kernel VMEM footprint.

    Footprint ~= 2 x input block (double-buffered DMA) + _F32_TEMPS x f32
    (tile_n, tile_c) intermediates.  Budget scales with physical VMEM, so
    bigger chips get bigger blocks and the ~0.35 us/grid-step overhead stays
    amortized (v7x gets the largest blocks it can afford within 64 MiB/TC).
    """
    budget = min(max(cap // 3, 8 * 1024 * 1024), 48 * 1024 * 1024)
    sub = max(8, 32 // itemsize)  # sublane multiple: f32 -> 8, bf16 -> 16, i8 -> 32

    per_row_full = 2 * c * itemsize + _F32_TEMPS * c * 4
    if sub * per_row_full <= budget:
        tile_c = c                       # whole class axis in one block (fast path)
        rows = budget // per_row_full
    else:
        # vocab-scale C: tile the class axis (online-LSE path), minimal row tile.
        rows = sub
        per_col = rows * (2 * itemsize + _F32_TEMPS * 4)
        tile_c = max(128, (budget // per_col) // 128 * 128)
        tile_c = min(tile_c, _round_up(c, 128))
    tile_n = max(sub, min(1024, (rows // sub) * sub))
    tile_n = min(tile_n, _round_up(n, sub))
    return int(tile_n), int(tile_c)


def _vmem_limit_bytes(tile_n, tile_c, itemsize, cap):
    footprint = (2 * tile_n * tile_c * itemsize
                 + _F32_TEMPS * tile_n * tile_c * 4
                 + 3 * tile_n * 4 + (1 << 14))
    return int(min(cap, max(32 * 1024 * 1024, 2 * footprint)))


def _label_smoothing_kernel(x_ref, tgt_ref, out_ref, m_sc, l_sc, corr_sc, *,
                            confidence, smoothing, n_rows, n_cols,
                            tile_n, tile_c):
    i = pl.program_id(0)          # row-tile index
    j = pl.program_id(1)          # class-tile index (reduction axis, last)
    nj = pl.num_programs(1)

    # One-time init of the global scalar accumulator (resident (1,1) out block).
    @pl.when(jnp.logical_and(i == 0, j == 0))
    def _():
        out_ref[...] = jnp.zeros_like(out_ref)

    # Per-row-tile init of the online-softmax state.
    @pl.when(j == 0)
    def _():
        m_sc[...] = jnp.full_like(m_sc, -jnp.inf)
        l_sc[...] = jnp.zeros_like(l_sc)
        corr_sc[...] = jnp.zeros_like(corr_sc)

    x = x_ref[...].astype(jnp.float32)   # native-dtype DMA, f32 math (v5e-safe)
    t, tc = x.shape

    # Global class index of each lane; mask padded lanes of a ragged last C tile.
    col = j * tile_c + jax.lax.broadcasted_iota(jnp.int32, (t, tc), 1)
    col_ok = col < n_cols
    x_lse = jnp.where(col_ok, x, -jnp.inf)   # true select: pad garbage never used

    # Online log-sum-exp update (numerically stable across C tiles).
    m_prev = m_sc[...]
    m_new = jnp.maximum(m_prev, jnp.max(x_lse, axis=-1, keepdims=True))
    l_sc[...] = (l_sc[...] * jnp.exp(m_prev - m_new)
                 + jnp.sum(jnp.exp(x_lse - m_new), axis=-1, keepdims=True))
    m_sc[...] = m_new

    # Fused weighted lane reduction: conf*x[tgt] + (smooth/C)*sum(x) in ONE pass.
    tgt = tgt_ref[...]                       # (T, 1) int32
    sm_c = smoothing / float(n_cols)
    w = jnp.where(col == tgt, confidence + sm_c, sm_c)
    x_safe = jnp.where(col_ok, x, 0.0)       # zero padded lanes (avoid NaN leak)
    corr_sc[...] += jnp.sum(w * x_safe, axis=-1, keepdims=True)

    # Finalize this row tile on the last class tile; fold into the scalar loss.
    @pl.when(j == nj - 1)
    def _():
        lse = m_sc[...] + jnp.log(l_sc[...])
        row = i * tile_n + jax.lax.broadcasted_iota(jnp.int32, (t, 1), 0)
        # per-row loss = lse - corr ; padded rows masked via true select.
        per_row = jnp.where(row < n_rows, lse - corr_sc[...], 0.0)
        out_ref[...] += jnp.sum(per_row, keepdims=True)

    # Batch mean on the very last grid step.
    @pl.when(jnp.logical_and(i == pl.num_programs(0) - 1, j == nj - 1))
    def _():
        out_ref[...] = out_ref[...] * (1.0 / float(n_rows))


def label_smoothing_loss(x, target, smoothing=0.1, tile_n=None, tile_c=None):
    """x: (N, C) logits (f32/bf16), target: (N,) int class ids -> scalar loss."""
    n, c = x.shape
    confidence = 1.0 - smoothing
    itemsize = jnp.dtype(x.dtype).itemsize

    cap = _vmem_capacity_bytes()
    auto_tn, auto_tc = _choose_tiles(n, c, itemsize, cap)
    tile_n = auto_tn if tile_n is None else int(tile_n)
    tile_c = auto_tc if tile_c is None else int(tile_c)
    vmem_limit = _vmem_limit_bytes(tile_n, tile_c, itemsize, cap)

    ni = pl.cdiv(n, tile_n)
    nj = pl.cdiv(c, tile_c)

    tgt2d = target.astype(jnp.int32).reshape(n, 1)

    kernel = functools.partial(
        _label_smoothing_kernel,
        confidence=float(confidence), smoothing=float(smoothing),
        n_rows=n, n_cols=c, tile_n=tile_n, tile_c=tile_c)

    cost = pl.CostEstimate(
        flops=int(6 * n * c),
        transcendentals=int(n * c),
        bytes_accessed=int(n * c * itemsize + n * 4 + 4))

    out = pl.pallas_call(
        kernel,
        out_shape=jax.ShapeDtypeStruct((1, 1), jnp.float32),
        grid_spec=pltpu.PrefetchScalarGridSpec(
            num_scalar_prefetch=0,
            grid=(ni, nj),
            in_specs=[
                pl.BlockSpec((tile_n, tile_c), lambda i, j: (i, j)),  # logits tile
                pl.BlockSpec((tile_n, 1), lambda i, j: (i, 0)),       # targets tile
            ],
            out_specs=pl.BlockSpec((1, 1), lambda i, j: (0, 0)),      # scalar acc
            scratch_shapes=[
                pltpu.VMEM((tile_n, 1), jnp.float32),   # running max
                pltpu.VMEM((tile_n, 1), jnp.float32),   # running sum-exp
                pltpu.VMEM((tile_n, 1), jnp.float32),   # running weighted corr
            ]),
        compiler_params=pltpu.CompilerParams(
            # Scalar accumulator is resident across the whole grid -> both axes
            # must be "arbitrary" (sequential); see header comment re: v7x.
            dimension_semantics=("arbitrary", "arbitrary"),
            vmem_limit_bytes=vmem_limit),
        cost_estimate=cost,
    )(x, tgt2d)

    return out[0, 0]


def _reference(x, target, smoothing):
    confidence = 1.0 - smoothing
    logprobs = jax.nn.log_softmax(x.astype(jnp.float32), axis=-1)
    nll = -jnp.take_along_axis(
        logprobs, target[:, None].astype(jnp.int32), axis=-1)[:, 0]
    smooth = -jnp.mean(logprobs, axis=-1)
    return jnp.mean(confidence * nll + smoothing * smooth)


if __name__ == "__main__":
    key = jax.random.PRNGKey(0)
    ks = jax.random.split(key, 8)
    smoothing = 0.1

    # 1) f32, single tile
    x = jax.random.normal(ks[0], (8, 32), dtype=jnp.float32)
    t = jax.random.randint(ks[1], (8,), 0, 32, dtype=jnp.int32)
    loss = jax.block_until_ready(label_smoothing_loss(x, t, smoothing))
    ref = _reference(x, t, smoothing)
    assert jnp.allclose(loss, ref, atol=1e-5, rtol=1e-5), (loss, ref)

    # 2) f32, ragged batch (N=12, tile_n=8) -> in-kernel row mask
    x = jax.random.normal(ks[2], (12, 128), dtype=jnp.float32)
    t = jax.random.randint(ks[3], (12,), 0, 128, dtype=jnp.int32)
    loss = jax.block_until_ready(label_smoothing_loss(x, t, smoothing, tile_n=8))
    ref = _reference(x, t, smoothing)
    assert jnp.allclose(loss, ref, atol=1e-5, rtol=1e-5), (loss, ref)

    # 3) bf16 logits kept bf16 through the DMA, upcast only inside the kernel
    x = jax.random.normal(ks[4], (16, 64), dtype=jnp.float32).astype(jnp.bfloat16)
    t = jax.random.randint(ks[5], (16,), 0, 64, dtype=jnp.int32)
    loss = jax.block_until_ready(label_smoothing_loss(x, t, smoothing))
    ref = _reference(x, t, smoothing)
    assert jnp.allclose(loss, ref, atol=1e-4, rtol=1e-4), (loss, ref)

    # 4) class-axis tiling (online LSE across 2 C tiles), ragged N and ragged C
    x = jax.random.normal(ks[6], (12, 200), dtype=jnp.float32)
    t = jax.random.randint(ks[7], (12,), 0, 200, dtype=jnp.int32)
    loss = jax.block_until_ready(
        label_smoothing_loss(x, t, smoothing, tile_n=8, tile_c=128))
    ref = _reference(x, t, smoothing)
    assert jnp.allclose(loss, ref, atol=1e-5, rtol=1e-5), (loss, ref)

    print("KERNEL_OK")
</pallas_src>

<mosaic_0001>
module attributes {stable_mosaic.version = 11 : i64} {
  func.func @_label_smoothing_kernel(%arg0: i32, %arg1: i32, %arg2: memref<8x32xf32, #tpu.memory_space<vmem>>, %arg3: memref<8x1xi32, #tpu.memory_space<vmem>>, %arg4: memref<1x1xf32, #tpu.memory_space<vmem>>, %arg5: memref<8x1xf32, #tpu.memory_space<vmem>>, %arg6: memref<8x1xf32, #tpu.memory_space<vmem>>, %arg7: memref<8x1xf32, #tpu.memory_space<vmem>>) attributes {dimension_semantics = [#tpu.dimension_semantics<arbitrary>, #tpu.dimension_semantics<arbitrary>], iteration_bounds = array<i64: 1, 1>, scalar_prefetch = 0 : i64, scratch_operands = 3 : i64, tpu.core_type = #tpu.core_type<tc>, window_params = [{transform_indices = @transform_0, window_bounds = array<i64: 8, 32>}, {transform_indices = @transform_1, window_bounds = array<i64: 8, 1>}, {pipeline_mode = #tpu.pipeline_mode<synchronous>, transform_indices = @transform_2, window_bounds = array<i64: 1, 1>}]} {
    %c0_i32 = arith.constant 0 : i32
    %0 = arith.cmpi eq, %arg0, %c0_i32 : i32
    %c0_i32_0 = arith.constant 0 : i32
    %1 = arith.cmpi eq, %arg1, %c0_i32_0 : i32
    %2 = arith.andi %0, %1 : i1
    %3 = arith.extui %2 : i1 to i32
    %c0_i32_1 = arith.constant 0 : i32
    %4 = arith.cmpi ne, %3, %c0_i32_1 : i32
    scf.if %4 {
      %cst_31 = arith.constant 0.000000e+00 : f32
      %55 = vector.broadcast %cst_31 : f32 to vector<1x1xf32>
      %c0_32 = arith.constant 0 : index
      %c0_33 = arith.constant 0 : index
      %56 = vector.load %arg4[%c0_32, %c0_33] : memref<1x1xf32, #tpu.memory_space<vmem>>, vector<1x1xf32>
      tpu.vector_store %arg4[%c0_32, %c0_33], %55 {strides = array<i32>} : memref<1x1xf32, #tpu.memory_space<vmem>>, vector<1x1xf32>,
    } else {
    }
    %c0_i32_2 = arith.constant 0 : i32
    %5 = arith.cmpi eq, %arg1, %c0_i32_2 : i32
    %6 = arith.extui %5 : i1 to i32
    %c0_i32_3 = arith.constant 0 : i32
    %7 = arith.cmpi ne, %6, %c0_i32_3 : i32
    scf.if %7 {
      %cst_31 = arith.constant 0xFF800000 : f32
      %55 = vector.broadcast %cst_31 : f32 to vector<8x1xf32>
      %c0_32 = arith.constant 0 : index
      %c0_33 = arith.constant 0 : index
      %56 = vector.load %arg5[%c0_32, %c0_33] : memref<8x1xf32, #tpu.memory_space<vmem>>, vector<8x1xf32>
      tpu.vector_store %arg5[%c0_32, %c0_33], %55 {strides = array<i32>} : memref<8x1xf32, #tpu.memory_space<vmem>>, vector<8x1xf32>,
      %cst_34 = arith.constant 0.000000e+00 : f32
      %57 = vector.broadcast %cst_34 : f32 to vector<8x1xf32>
      %c0_35 = arith.constant 0 : index
      %c0_36 = arith.constant 0 : index
      %58 = vector.load %arg6[%c0_35, %c0_36] : memref<8x1xf32, #tpu.memory_space<vmem>>, vector<8x1xf32>
      tpu.vector_store %arg6[%c0_35, %c0_36], %57 {strides = array<i32>} : memref<8x1xf32, #tpu.memory_space<vmem>>, vector<8x1xf32>,
      %cst_37 = arith.constant 0.000000e+00 : f32
      %59 = vector.broadcast %cst_37 : f32 to vector<8x1xf32>
      %c0_38 = arith.constant 0 : index
      %c0_39 = arith.constant 0 : index
      %60 = vector.load %arg7[%c0_38, %c0_39] : memref<8x1xf32, #tpu.memory_space<vmem>>, vector<8x1xf32>
      tpu.vector_store %arg7[%c0_38, %c0_39], %59 {strides = array<i32>} : memref<8x1xf32, #tpu.memory_space<vmem>>, vector<8x1xf32>,
    } else {
    }
    %c0 = arith.constant 0 : index
    %c0_4 = arith.constant 0 : index
    %8 = vector.load %arg2[%c0, %c0_4] : memref<8x32xf32, #tpu.memory_space<vmem>>, vector<8x32xf32>
    %c32_i32 = arith.constant 32 : i32
    %9 = arith.muli %arg1, %c32_i32 : i32
    %10 = tpu.iota {dimensions = array<i32: 1>} : vector<8x32xi32>
    %11 = vector.broadcast %9 : i32 to vector<8x32xi32>
    %12 = arith.addi %11, %10 : vector<8x32xi32>
    %c32_i32_5 = arith.constant 32 : i32
    %13 = vector.broadcast %c32_i32_5 : i32 to vector<8x32xi32>
    %14 = arith.cmpi slt, %12, %13 : vector<8x32xi32>
    %cst = arith.constant 0xFF800000 : f32
    %15 = vector.broadcast %cst : f32 to vector<8x32xf32>
    %16 = arith.select %14, %8, %15 : vector<8x32xi1>, vector<8x32xf32>
    %c0_6 = arith.constant 0 : index
    %c0_7 = arith.constant 0 : index
    %17 = vector.load %arg5[%c0_6, %c0_7] : memref<8x1xf32, #tpu.memory_space<vmem>>, vector<8x1xf32>
    %cst_8 = arith.constant dense<0xFF800000> : vector<8xf32>
    %18 = vector.multi_reduction <maximumf>, %16, %cst_8 [1] : vector<8x32xf32> to vector<8xf32>
    %19 = vector.shape_cast %18 : vector<8xf32> to vector<8x1xf32>
    %20 = arith.maximumf %17, %19 : vector<8x1xf32>
    %c0_9 = arith.constant 0 : index
    %c0_10 = arith.constant 0 : index
    %21 = vector.load %arg6[%c0_9, %c0_10] : memref<8x1xf32, #tpu.memory_space<vmem>>, vector<8x1xf32>
    %22 = arith.subf %17, %20 : vector<8x1xf32>
    %23 = math.exp %22 : vector<8x1xf32>
    %24 = arith.mulf %21, %23 : vector<8x1xf32>
    %25 = vector.broadcast %20 : vector<8x1xf32> to vector<8x32xf32>
    %26 = arith.subf %16, %25 : vector<8x32xf32>
    %27 = math.exp %26 : vector<8x32xf32>
    %cst_11 = arith.constant dense<0.000000e+00> : vector<8xf32>
    %28 = vector.multi_reduction <add>, %27, %cst_11 [1] : vector<8x32xf32> to vector<8xf32>
    %29 = vector.shape_cast %28 : vector<8xf32> to vector<8x1xf32>
    %30 = arith.addf %24, %29 : vector<8x1xf32>
    %c0_12 = arith.constant 0 : index
    %c0_13 = arith.constant 0 : index
    %31 = vector.load %arg6[%c0_12, %c0_13] : memref<8x1xf32, #tpu.memory_space<vmem>>, vector<8x1xf32>
    tpu.vector_store %arg6[%c0_12, %c0_13], %30 {strides = array<i32>} : memref<8x1xf32, #tpu.memory_space<vmem>>, vector<8x1xf32>,
    %c0_14 = arith.constant 0 : index
    %c0_15 = arith.constant 0 : index
    %32 = vector.load %arg5[%c0_14, %c0_15] : memref<8x1xf32, #tpu.memory_space<vmem>>, vector<8x1xf32>
    tpu.vector_store %arg5[%c0_14, %c0_15], %20 {strides = array<i32>} : memref<8x1xf32, #tpu.memory_space<vmem>>, vector<8x1xf32>,
    %c0_16 = arith.constant 0 : index
    %c0_17 = arith.constant 0 : index
    %33 = vector.load %arg3[%c0_16, %c0_17] : memref<8x1xi32, #tpu.memory_space<vmem>>, vector<8x1xi32>
    %34 = vector.broadcast %33 : vector<8x1xi32> to vector<8x32xi32>
    %35 = arith.cmpi eq, %12, %34 : vector<8x32xi32>
    %cst_18 = arith.constant 0.903124988 : f32
    %cst_19 = arith.constant 3.125000e-03 : f32
    %36 = vector.broadcast %cst_18 : f32 to vector<8x32xf32>
    %37 = vector.broadcast %cst_19 : f32 to vector<8x32xf32>
    %38 = arith.select %35, %36, %37 : vector<8x32xi1>, vector<8x32xf32>
    %cst_20 = arith.constant 0.000000e+00 : f32
    %39 = vector.broadcast %cst_20 : f32 to vector<8x32xf32>
    %40 = arith.select %14, %8, %39 : vector<8x32xi1>, vector<8x32xf32>
    %c0_21 = arith.constant 0 : index
    %c0_22 = arith.constant 0 : index
    %41 = vector.load %arg7[%c0_21, %c0_22] : memref<8x1xf32, #tpu.memory_space<vmem>>, vector<8x1xf32>
    %42 = arith.mulf %38, %40 : vector<8x32xf32>
    %cst_23 = arith.constant dense<0.000000e+00> : vector<8xf32>
    %43 = vector.multi_reduction <add>, %42, %cst_23 [1] : vector<8x32xf32> to vector<8xf32>
    %44 = vector.shape_cast %43 : vector<8xf32> to vector<8x1xf32>
    %45 = arith.addf %41, %44 : vector<8x1xf32>
    %c0_24 = arith.constant 0 : index
    %c0_25 = arith.constant 0 : index
    %46 = vector.load %arg7[%c0_24, %c0_25] : memref<8x1xf32, #tpu.memory_space<vmem>>, vector<8x1xf32>
    tpu.vector_store %arg7[%c0_24, %c0_25], %45 {strides = array<i32>} : memref<8x1xf32, #tpu.memory_space<vmem>>, vector<8x1xf32>,
    %c0_i32_26 = arith.constant 0 : i32
    %47 = arith.cmpi eq, %arg1, %c0_i32_26 : i32
    %48 = arith.extui %47 : i1 to i32
    %c0_i32_27 = arith.constant 0 : i32
    %49 = arith.cmpi ne, %48, %c0_i32_27 : i32
    scf.if %49 {
      %c0_31 = arith.constant 0 : index
      %c0_32 = arith.constant 0 : index
      %55 = vector.load %arg5[%c0_31, %c0_32] : memref<8x1xf32, #tpu.memory_space<vmem>>, vector<8x1xf32>
      %c0_33 = arith.constant 0 : index
      %c0_34 = arith.constant 0 : index
      %56 = vector.load %arg6[%c0_33, %c0_34] : memref<8x1xf32, #tpu.memory_space<vmem>>, vector<8x1xf32>
      %57 = math.log %56 : vector<8x1xf32>
      %58 = arith.addf %55, %57 : vector<8x1xf32>
      %c8_i32 = arith.constant 8 : i32
      %59 = arith.muli %arg0, %c8_i32 : i32
      %60 = tpu.iota {dimensions = array<i32: 0>} : vector<8x1xi32>
      %61 = vector.broadcast %59 : i32 to vector<8x1xi32>
      %62 = arith.addi %61, %60 : vector<8x1xi32>
      %c8_i32_35 = arith.constant 8 : i32
      %63 = vector.broadcast %c8_i32_35 : i32 to vector<8x1xi32>
      %64 = arith.cmpi slt, %62, %63 : vector<8x1xi32>
      %c0_36 = arith.constant 0 : index
      %c0_37 = arith.constant 0 : index
      %65 = vector.load %arg7[%c0_36, %c0_37] : memref<8x1xf32, #tpu.memory_space<vmem>>, vector<8x1xf32>
      %66 = arith.subf %58, %65 : vector<8x1xf32>
      %cst_38 = arith.constant 0.000000e+00 : f32
      %67 = vector.broadcast %cst_38 : f32 to vector<8x1xf32>
      %68 = arith.select %64, %66, %67 : vector<8x1xi1>, vector<8x1xf32>
      %c0_39 = arith.constant 0 : index
      %c0_40 = arith.constant 0 : index
      %69 = vector.load %arg4[%c0_39, %c0_40] : memref<1x1xf32, #tpu.memory_space<vmem>>, vector<1x1xf32>
      %70 = vector.shape_cast %68 : vector<8x1xf32> to vector<1x8x1xf32>
      %cst_41 = arith.constant dense<0.000000e+00> : vector<1xf32>
      %71 = vector.multi_reduction <add>, %70, %cst_41 [1, 2] : vector<1x8x1xf32> to vector<1xf32>
      %72 = vector.shape_cast %71 : vector<1xf32> to vector<1x1x1xf32>
      %73 = vector.extract %72[0, 0, 0] : f32 from vector<1x1x1xf32>
      %74 = vector.broadcast %73 : f32 to vector<1x1xf32>
      %75 = arith.addf %69, %74 : vector<1x1xf32>
      %c0_42 = arith.constant 0 : index
      %c0_43 = arith.constant 0 : index
      %76 = vector.load %arg4[%c0_42, %c0_43] : memref<1x1xf32, #tpu.memory_space<vmem>>, vector<1x1xf32>
      tpu.vector_store %arg4[%c0_42, %c0_43], %75 {strides = array<i32>} : memref<1x1xf32, #tpu.memory_space<vmem>>, vector<1x1xf32>,
    } else {
    }
    %c0_i32_28 = arith.constant 0 : i32
    %50 = arith.cmpi eq, %arg0, %c0_i32_28 : i32
    %c0_i32_29 = arith.constant 0 : i32
    %51 = arith.cmpi eq, %arg1, %c0_i32_29 : i32
    %52 = arith.andi %50, %51 : i1
    %53 = arith.extui %52 : i1 to i32
    %c0_i32_30 = arith.constant 0 : i32
    %54 = arith.cmpi ne, %53, %c0_i32_30 : i32
    scf.if %54 {
      %c0_31 = arith.constant 0 : index
      %c0_32 = arith.constant 0 : index
      %55 = vector.load %arg4[%c0_31, %c0_32] : memref<1x1xf32, #tpu.memory_space<vmem>>, vector<1x1xf32>
      %cst_33 = arith.constant 1.250000e-01 : f32
      %56 = vector.broadcast %cst_33 : f32 to vector<1x1xf32>
      %57 = arith.mulf %55, %56 : vector<1x1xf32>
      %c0_34 = arith.constant 0 : index
      %c0_35 = arith.constant 0 : index
      %58 = vector.load %arg4[%c0_34, %c0_35] : memref<1x1xf32, #tpu.memory_space<vmem>>, vector<1x1xf32>
      tpu.vector_store %arg4[%c0_34, %c0_35], %57 {strides = array<i32>} : memref<1x1xf32, #tpu.memory_space<vmem>>, vector<1x1xf32>,
    } else {
    }
    return
  }
  func.func @transform_0(%arg0: i32, %arg1: i32) -> (i32, i32) {
    %c0_i32 = arith.constant 0 : i32
    return %arg0, %arg1 : i32, i32
  }
  func.func @transform_1(%arg0: i32, %arg1: i32) -> (i32, i32) {
    %c0_i32 = arith.constant 0 : i32
    %c0_i32_0 = arith.constant 0 : i32
    return %arg0, %c0_i32 : i32, i32
  }
  func.func @transform_2(%arg0: i32, %arg1: i32) -> (i32, i32) {
    %c0_i32 = arith.constant 0 : i32
    %c0_i32_0 = arith.constant 0 : i32
    %c0_i32_1 = arith.constant 0 : i32
    return %c0_i32, %c0_i32_0 : i32, i32
  }
}

</mosaic_0001>

<bundles_post_ra>
// kernel: tpu_custom_call.1
= control target key start
LH: loop header
LB: loop body
LE: loop exit
PB: predicated region body
PF: predicated region fallthrough
CT: control target
= control target key end

     0   :  { %v29_v0 = vlaneseq  ;;  %s217_s0 = inlined_call_operand.vmem [shape: f32[8,32], index: 0, kind: input, shape index: {}]   ;;  %s218_s1 = inlined_call_operand.vmem [shape: s32[8,1], index: 1, kind: input, shape index: {}]   ;;  %s219_s2 = inlined_call_operand.hbm [shape: f32[1,1], index: 2, kind: output, shape index: {}]  }
   0x1   :  { %7 = vsyncpa [#allocation6], 0  ;;  %v27_v1 = vld [vmem:[%s217_s0] sm:$0xff]  ;;  %vm36_vm0 = vcmask 261120   ;;  %vm23_vm2 = vcmask 7168   ;;  %v166_v6 = vmov -inf  }
   0x2   :  { %v30_v2 = vand.u32 127, %v29_v0  ;;  %24 = vst.msk [vmem:[#allocation2] sm:$0xff] %vm23_vm2, %v166_v6  ;;  %v167_v7 = vmov 0   ;;  %v61_v8 = vld [vmem:[%s218_s1] sm:$0xff]  ;;  %v168_v9 = vmov 0.0   ;;  %vm18_vm4 = vcmask 0  }
   0x3   :  { %134 = vset.pattern.permute.xlu0 %v167_v7  ;;  %135 = vset.pattern.permute.xlu1 %v167_v7  ;;  %25 = vst.msk [vmem:[#allocation3] sm:$0xff] %vm23_vm2, %v168_v9  ;;  %26 = vst.msk [vmem:[#allocation4] sm:$0xff] %vm23_vm2, %v168_v9  ;;  %v169_v18 = vmov 0.003125   ;;  %s170_s1 = smov [#allocation5]  }
   0x4   :  { %vm33_vm1 = vcmp.lt.s32.totalorder %v30_v2, 32  ;;  %63 = vperm.xlu1 %135, %v61_v8   ;;  %19 = vst.msk [vmem:[#allocation5] sm:$0x1] %vm18_vm4, %v168_v9  ;;  %s119_s13 = sshll.u32 %s170_s1, 4  ;;  %s120_s13 = int_to_ptr.vmem [resolvable:$true] %s119_s13 }
   0x5   :  { %v34_v3 = vsel %vm33_vm1, %v27_v1, -inf  ;;  %v67_v4 = vsel %vm33_vm1, %v27_v1, 0.0  ;;  %s142_s14 = scalar_lea.vmem %s120_s13, 16  ;;  %s146_s15 = scalar_lea.vmem %s120_s13, 32 }
   0x6   :  { %v37_v5 = vsel %vm36_vm0, %v34_v3, -inf  ;;  %p143_p0 = scmp.ne.s32.totalorder %s120_s13, %s142_s14  ;;  %p147_p1 = scmp.lt.s32.totalorder %s120_s13, %s120_s13 }
   0x7   :  { %38 = vmax.xlane.f32.xlu0 %v37_v5  ;;  %p148_p2 = scmp.lt.s32.totalorder %s146_s15, %s142_s14 }
   0x9   :  { %v35_v10 = vld [vmem:[#allocation2] sm:$0xff]  ;;  %p149_p3 = por %p148_p2, %p147_p1 }
   0xa   :  { %v41_v26 = vld [vmem:[#allocation3] sm:$0xff]  ;;  %v68_v30 = vld [vmem:[#allocation4] sm:$0xff] }
   0xb   :  { %v92_v48 = vld [vmem:[#allocation5] sm:$0x1]  ;;  %p150_p4 = pnand %p149_p3, %p143_p0 }
  0x83   :  { %v64_v17 = vpop.permute.xlu1 %63 }
  0x84   :  { %vm65_vm3 = vcmp.eq.s32.totalorder %v30_v2, %v64_v17 }
  0x85   :  { %v66_v19 = vsel %vm65_vm3, 0.903125, %v169_v18 }
  0x86   :  { %v69_v20 = vmul.f32 %v67_v4, %v66_v19 }
  0x88   :  { %v70_v23 = vsel %vm36_vm0, %v69_v20, 0.0 }
  0x94   :  { %v39_v11 = vpop.xlane.xlu0 %38 }
  0x95   :  { %v40_v12 = vmax.f32 %v35_v10, %v39_v11 }
  0x97   :  { %v42_v13 = vsub.f32 %v35_v10, %v40_v12  ;;  %60 = vst.msk [vmem:[#allocation2] sm:$0xff] %vm23_vm2, %v40_v12  ;;  %48 = vperm.xlu0 %134, %v40_v12  }
  0x99   :  { %v43_v24 = vmul.f32 1.442695, %v42_v13 }
  0x9e   :  { %v78_v36 = vld [vmem:[#allocation2] sm:$0xff] }
 0x116   :  { %v49_v14 = vpop.permute.xlu0 %48 }
 0x117   :  { %v51_v15 = vsub.f32 %v34_v3, %v49_v14 }
 0x119   :  { %v52_v16 = vmul.f32 1.442695, %v51_v15 }
 0x11b   :  { %136 = vpow2.f32 %v52_v16 }
 0x11c   :  { %138 = vpow2.f32 %v43_v24 }
 0x125   :  { %v137_v21 = vpop.eup %136 }
 0x126   :  { %v54_v22 = vsel %vm36_vm0, %v137_v21, 0.0  ;;  %v139_v25 = vpop.eup %138 }
 0x127   :  { %55 = vadd.xlane.f32.xlu1 %v54_v22  ;;  %v45_v27 = vmul.f32 %v139_v25, %v41_v26 }
 0x12b   :  { %71 = vadd.xlane.f32.xlu1 %v70_v23 }
 0x1b4   :  { %v56_v28 = vpop.xlane.xlu1 %55 }
 0x1b5   :  { %v57_v29 = vadd.f32 %v56_v28, %v45_v27 }
 0x1b7   :  { %59 = vst.msk [vmem:[#allocation3] sm:$0xff] %vm23_vm2, %v57_v29 }
 0x1b8   :  { %v72_v31 = vpop.xlane.xlu1 %71 }
 0x1b9   :  { %v73_v32 = vadd.f32 %v72_v31, %v68_v30 }
 0x1bb   :  { %74 = vst.msk [vmem:[#allocation4] sm:$0xff] %vm23_vm2, %v73_v32 }
 0x1be   :  { %v79_v33 = vld [vmem:[#allocation3] sm:$0xff] }
 0x1bf   :  { %140 = vlog2.f32 %v79_v33 }
 0x1c2   :  { %v89_v37 = vld [vmem:[#allocation4] sm:$0xff] }
 0x1c9   :  { %v141_v34 = vpop.eup %140 }
 0x1ca   :  { %v81_v35 = vmul.f32 0.6931472, %v141_v34 }
 0x1cc   :  { %v82_v38 = vadd.f32 %v81_v35, %v78_v36 }
 0x1ce   :  { %v90_v39 = vsub.f32 %v82_v38, %v89_v37 }
 0x1d0   :  { %v93_v40 = vsel %vm23_vm2, %v90_v39, 0.0 }
 0x1d1   :  { %94 = vadd.xlane.f32.xlu1 %v93_v40 }
 0x25e   :  { %v95_v41 = vpop.xlane.xlu1 %94 }
 0x25f   :  { %v96_v42 = vrot.slane %v95_v41, 4 }
 0x261   :  { %v97_v43 = vadd.f32 %v96_v42, %v95_v41 }
 0x263   :  { %v98_v44 = vrot.slane %v97_v43, 2 }
 0x265   :  { %v99_v45 = vadd.f32 %v98_v44, %v97_v43 }
 0x267   :  { %v100_v46 = vrot.slane %v99_v45, 1 }
 0x269   :  { %v101_v47 = vadd.f32 %v100_v46, %v99_v45 }
 0x26b   :  { %127 = vpush %v101_v47 }
 0x29c   :  { %s128_s0 = spop %127 }
 0x29d   :  { %v103_v49 = vstv %s128_s0 }
 0x29e   :  { %v104_v50 = vadd.f32 %v103_v49, %v92_v48 }
 0x2a0   :  { %106 = vst.msk [vmem:[#allocation5] sm:$0x1] %vm18_vm4, %v104_v50 }
 0x2a7   :  { %v109_v51 = vld [vmem:[#allocation5] sm:$0x1] }
 0x2a8   :  { %v110_v52 = vmul.f32 0.125, %v109_v51 }
 0x2aa   :  { %112 = vst.msk [vmem:[#allocation5] sm:$0x1] %vm18_vm4, %v110_v52 }
 0x2ab   :  { %153 = shalt.err (!%p150_p4)
}
 0x2ac   :  { %s154_s18 = scalar_lea.hbm %s219_s2, 16 }
 0x2ad   :  { %p155_p5 = scmp.ne.s32.totalorder %s219_s2, %s154_s18  ;;  %p158_p6 = scmp.lt.u32.totalorder %s154_s18, %s219_s2 }
 0x2af   :  { %p160_p7 = pnand %p158_p6, %p155_p5 }
 0x2b1   :  { %163 = shalt.err (!%p160_p7)
}
 0x2b2   :  { %122 = dma.vmem_to_hbm [thread:$0]  %s120_s13, 16, %s219_s2, [#allocation6]  }
 0x2b3   :  { %164 = dma.done.wait [#allocation6], 16  }
 0x2b4   :  { %165 = vsyncadd [#allocation6], 4294967280 }
 0x2b5   :  { %126 = vsyncpa [#allocation6], 1 }

</bundles_post_ra>
